<compile_context>
chip_gen: v5e
topology: v5e:2x2
jax: 0.10.0
libtpu: 0.0.40
codegen_flags: <defaults>
</compile_context>

<pallas_src>
import functools

import jax
import jax.numpy as jnp
from jax import lax
from jax.experimental import pallas as pl
from jax.experimental.pallas import tpu as pltpu

WINDOW_RADIUS = 4
DERIV_SIZE = 4
_MIB = 1024 * 1024


def _round_up(x, m):
    return ((x + m - 1) // m) * m


def _vmem_capacity_bytes():
    """Physical VMEM per core (generation aware), with a conservative fallback."""
    try:
        cap = int(pltpu.get_tpu_info().vmem_capacity_bytes)
        if cap >= 32 * _MIB:
            return cap
    except Exception:
        pass
    return 64 * _MIB          # v7x-safe fallback


def _pick_block_n(n, h, w, in_itemsize, d_out, capacity):
    """Largest N-block whose per-step VMEM working set fits the generation budget."""
    lane_w = _round_up(w, 128)
    lane_d = _round_up(d_out, 128)
    # ~24 MiB on v7x (64 MiB parts), ~56 MiB on v5e/v6e (128 MiB parts).
    budget = max(16 * _MIB, capacity // 2 - 8 * _MIB)
    # Per N-row while one grid step is live:
    #   2 inputs x 2 pipeline buffers in the native dtype
    #   + ~4 f32 temporaries (window-sum accumulator, masked temp) for both reductions
    #   + 2 outputs x 2 pipeline buffers of the lane-padded diag row.
    per_row = h * lane_w * (2 * 2 * in_itemsize + 4 * 4) + 2 * 2 * lane_d * 4
    bn = max(1, budget // per_row)
    bn = min(bn, n)
    if bn >= 8:
        bn -= bn % 8          # keep the output sublane axis 8-aligned when possible
    return int(bn)


def _p1_vmem_limit(bn, h, w, d_out, in_itemsize, capacity):
    lane_w = _round_up(w, 128)
    lane_d = _round_up(d_out, 128)
    sub_bn = _round_up(bn, 8)
    footprint = (2 * 2 * sub_bn * h * lane_w * in_itemsize      # input double-buffers
                 + 4 * sub_bn * h * lane_w * 4                  # f32 temporaries
                 + 2 * 2 * sub_bn * lane_d * 4)                 # output double-buffers
    want = 2 * footprint                                         # safety margin
    return int(min(max(want, 32 * _MIB), capacity - 16 * _MIB))


def _p2_vmem_limit(n_pad, d_out, capacity):
    lane_d = _round_up(d_out, 128)
    sub_n = _round_up(n_pad, 8)
    footprint = 2 * sub_n * lane_d * 4                           # both diag inputs
    want = 8 * footprint + 4 * _MIB                              # iv/dv temps + headroom
    return int(min(max(want, 32 * _MIB), capacity - 16 * _MIB))


def _pooled_diag_kernel(pred_ref, targ_ref, dp_ref, dt_ref, *,
                        window_radius, d_len, use_roll):
    """One N-block: (block_n, H, W) -> (block_n, D_out) diagonal of the AvgPool2d."""
    h, w = pred_ref.shape[1], pred_ref.shape[2]
    inv = 1.0 / float(window_radius * window_radius)

    if use_roll:
        # Band mask over the full lane width (lanes >= d_len zeroed); built once and
        # shared between the pred and target reductions.
        r_idx = lax.broadcasted_iota(jnp.int32, (h, w), 0)
        c_idx = lax.broadcasted_iota(jnp.int32, (h, w), 1)
        band = ((c_idx <= r_idx) & (r_idx < c_idx + window_radius)
                & (c_idx < d_len))[None, :, :]

        def pooled_diag(x_ref):
            x = x_ref[...]
            # Horizontal window sum via lane rotation (XLU), no unaligned lane slices:
            #   s[n, r, i] = sum_q x[n, r, i + q]   (exact for i < d_len; wrap lanes are
            # masked out by `band` below).
            s = x.astype(jnp.float32)
            for q in range(1, window_radius):
                s = s + pltpu.roll(x, shift=w - q, axis=2).astype(jnp.float32)
            # Diagonal of the 2-D average pool straight from s via band mask + sublane
            # reduce; the full pooled (D, D) matrix is never materialized.
            # TODO(synk): a per-lane strided sublane roll would cut this O(H) select +
            # reduce down to O(window_radius) contributing rows.
            return jnp.sum(jnp.where(band, s, 0.0), axis=1) * inv
    else:
        r_idx = lax.broadcasted_iota(jnp.int32, (h, d_len), 0)
        c_idx = lax.broadcasted_iota(jnp.int32, (h, d_len), 1)
        band = ((c_idx <= r_idx) & (r_idx < c_idx + window_radius))[None, :, :]

        def pooled_diag(x_ref):
            x = x_ref[...]
            # Small-map path (W < 128): static slices; the f32 cast is folded per term
            # so no full f32 copy of the tile is materialized for sub-32-bit inputs.
            s = x[:, :, 0:d_len].astype(jnp.float32)
            for q in range(1, window_radius):
                s = s + x[:, :, q:q + d_len].astype(jnp.float32)
            return jnp.sum(jnp.where(band, s, 0.0), axis=1) * inv

    dp_ref[...] = pooled_diag(pred_ref)
    dt_ref[...] = pooled_diag(targ_ref)


def _finalize_kernel(dp_ref, dt_ref, loss_ref, *, n_true, d_len, deriv_size):
    """(N, D_out) pooled diagonals -> scalar MSE of the insulation derivatives."""
    n_pad, d_out = dp_ref.shape
    l_len = d_len - 2 * deriv_size + 1
    row = lax.broadcasted_iota(jnp.int32, (n_pad, d_out), 0)
    col = lax.broadcasted_iota(jnp.int32, (n_pad, d_out), 1)
    valid = (row < n_true) & (col < d_len)        # explicit masks, no zero sentinel
    inv_cnt = 1.0 / float(n_true * d_len)

    def dv_of(ref):
        diag = ref[...]
        mean = jnp.sum(jnp.where(valid, diag, 0.0)) * inv_cnt
        # Substitute the mean at padded rows / lanes: iv -> 0 there, and those positions
        # never feed a valid derivative lane, so they drop out of the loss exactly.
        safe = jnp.where(valid, diag, mean)
        iv = jnp.log2(safe / mean)
        # AvgPool1d(k=deriv_size, stride=1) on the shifted halves; dv = top - bottom.
        top = iv[:, deriv_size:deriv_size + l_len]
        bot = iv[:, 0:l_len]
        for t in range(1, deriv_size):
            top = top + iv[:, deriv_size + t:deriv_size + t + l_len]
            bot = bot + iv[:, t:t + l_len]
        return (top - bot) * (1.0 / float(deriv_size))

    diff = dv_of(dt_ref) - dv_of(dp_ref)                       # (n_pad, l_len)
    # F.mse_loss default reduction = mean over the true (n_true * l_len) elements.
    loss_ref[...] = jnp.sum(diff * diff, keepdims=True) * (1.0 / float(n_true * l_len))


def insulation_loss(output, target, window_radius=WINDOW_RADIUS, deriv_size=DERIV_SIZE):
    """output, target: (B, C, H, W) NCHW, same as the PyTorch module. Returns scalar f32."""
    assert output.shape == target.shape, "output/target shape mismatch"
    b, c, h, w = output.shape
    assert h == w, "expects square contact maps"
    n = b * c
    d_len = h - window_radius + 1
    l_len = d_len - 2 * deriv_size + 1
    assert d_len >= 1 and l_len >= 1, "map too small for window_radius/deriv_size"

    # Native-dtype views; the kernel upcasts to f32 after the DMA (halves HBM traffic
    # for bf16/fp16 inputs).
    x_p = output.reshape(n, h, w)
    x_t = target.reshape(n, h, w)
    in_itemsize = max(jnp.dtype(output.dtype).itemsize, jnp.dtype(target.dtype).itemsize)

    use_roll = (w % 128 == 0)
    d_out = w if use_roll else d_len             # lane-dense diag rows when W % 128 == 0

    capacity = _vmem_capacity_bytes()
    block_n = _pick_block_n(n, h, w, in_itemsize, d_out, capacity)
    num_blocks = -(-n // block_n)                # cdiv
    n_pad = num_blocks * block_n
    if n_pad != n:
        pad = ((0, n_pad - n), (0, 0), (0, 0))
        x_p = jnp.pad(x_p, pad)
        x_t = jnp.pad(x_t, pad)

    diag_kernel = functools.partial(
        _pooled_diag_kernel,
        window_radius=window_radius, d_len=d_len, use_roll=use_roll)

    # Pass 1: parallel over N blocks, pooled diagonals written lane-dense to HBM.
    diag_p, diag_t = pl.pallas_call(
        diag_kernel,
        out_shape=(jax.ShapeDtypeStruct((n_pad, d_out), jnp.float32),
                   jax.ShapeDtypeStruct((n_pad, d_out), jnp.float32)),
        grid_spec=pltpu.PrefetchScalarGridSpec(
            num_scalar_prefetch=0,
            grid=(num_blocks,),
            in_specs=[
                pl.BlockSpec((block_n, h, w), lambda i: (i, 0, 0)),
                pl.BlockSpec((block_n, h, w), lambda i: (i, 0, 0)),
            ],
            out_specs=[
                pl.BlockSpec((block_n, d_out), lambda i: (i, 0)),
                pl.BlockSpec((block_n, d_out), lambda i: (i, 0)),
            ],
        ),
        compiler_params=pltpu.CompilerParams(
            dimension_semantics=("parallel",),
            vmem_limit_bytes=_p1_vmem_limit(block_n, h, w, d_out, in_itemsize, capacity),
        ),
    )(x_p, x_t)

    # Pass 2: tiny finalize kernel (mean -> log2 -> derivative pool -> MSE).
    # TODO(synk): block this pass over N if B*C*D ever exceeds a few tens of MiB.
    fin_kernel = functools.partial(
        _finalize_kernel, n_true=n, d_len=d_len, deriv_size=deriv_size)

    loss = pl.pallas_call(
        fin_kernel,
        out_shape=jax.ShapeDtypeStruct((1, 1), jnp.float32),
        grid_spec=pltpu.PrefetchScalarGridSpec(
            num_scalar_prefetch=0,
            grid=(1,),
            in_specs=[
                pl.BlockSpec((n_pad, d_out), lambda i: (0, 0)),
                pl.BlockSpec((n_pad, d_out), lambda i: (0, 0)),
            ],
            out_specs=pl.BlockSpec((1, 1), lambda i: (0, 0)),
        ),
        compiler_params=pltpu.CompilerParams(
            dimension_semantics=("arbitrary",),
            vmem_limit_bytes=_p2_vmem_limit(n_pad, d_out, capacity),
        ),
    )(diag_p, diag_t)
    return loss[0, 0]


def _reference_loss(output, target, window_radius=WINDOW_RADIUS, deriv_size=DERIV_SIZE):
    """Pure-JAX reference mirroring the PyTorch module semantics."""
    def dv(x):
        _, _, hh, _ = x.shape
        d = hh - window_radius + 1
        idx = jnp.arange(d)
        acc = jnp.zeros(x.shape[:2] + (d,), jnp.float32)
        for p in range(window_radius):
            for q in range(window_radius):
                acc = acc + x[:, :, idx + p, idx + q]
        diag = acc / float(window_radius * window_radius)
        iv = jnp.log2(diag / jnp.mean(diag))
        l = d - 2 * deriv_size + 1
        top = sum(iv[:, :, deriv_size + k: deriv_size + k + l]
                  for k in range(deriv_size)) / deriv_size
        bottom = sum(iv[:, :, k: k + l] for k in range(deriv_size)) / deriv_size
        return top - bottom

    od = dv(output.astype(jnp.float32))
    td = dv(target.astype(jnp.float32))
    return jnp.mean((td - od) ** 2)


if __name__ == "__main__":
    key = jax.random.PRNGKey(0)
    k1, k2, k3, k4, k5, k6 = jax.random.split(key, 6)

    # Case 1: B*C = 8, H = W = 16 -> single grid step, small-map (static-slice) path.
    B, C, H, W = 2, 4, 16, 16
    out1 = jax.random.uniform(k1, (B, C, H, W), jnp.float32, minval=0.5, maxval=2.0)
    tar1 = jax.random.uniform(k2, (B, C, H, W), jnp.float32, minval=0.5, maxval=2.0)
    loss1 = jax.block_until_ready(insulation_loss(out1, tar1))
    ref1 = jax.block_until_ready(_reference_loss(out1, tar1))
    assert jnp.isfinite(loss1), "loss is not finite"
    assert jnp.allclose(loss1, ref1, rtol=1e-4, atol=1e-5), (loss1, ref1)

    # Case 2: B*C = 12 -> block_n = 8, two parallel grid steps + zero-padded tail rows
    # (exercises the multi-block path and the explicit row masking in the finalize).
    B2, C2 = 3, 4
    out2 = jax.random.uniform(k3, (B2, C2, H, W), jnp.float32, minval=0.5, maxval=2.0)
    tar2 = jax.random.uniform(k4, (B2, C2, H, W), jnp.float32, minval=0.5, maxval=2.0)
    loss2 = jax.block_until_ready(insulation_loss(out2, tar2))
    ref2 = jax.block_until_ready(_reference_loss(out2, tar2))
    assert jnp.isfinite(loss2), "loss is not finite"
    assert jnp.allclose(loss2, ref2, rtol=1e-4, atol=1e-5), (loss2, ref2)

    # Case 3: H = W = 128 (lane width multiple of 128) -> pltpu.roll window-sum path
    # with lane-dense (N, 128) diag outputs.
    B3, C3, H3, W3 = 1, 2, 128, 128
    out3 = jax.random.uniform(k5, (B3, C3, H3, W3), jnp.float32, minval=0.5, maxval=2.0)
    tar3 = jax.random.uniform(k6, (B3, C3, H3, W3), jnp.float32, minval=0.5, maxval=2.0)
    loss3 = jax.block_until_ready(insulation_loss(out3, tar3))
    ref3 = jax.block_until_ready(_reference_loss(out3, tar3))
    assert jnp.isfinite(loss3), "loss is not finite"
    assert jnp.allclose(loss3, ref3, rtol=1e-4, atol=1e-5), (loss3, ref3)

    print("KERNEL_OK")
</pallas_src>

<mosaic_0001>
module attributes {stable_mosaic.version = 11 : i64} {
  func.func @_pooled_diag_kernel(%arg0: i32, %arg1: memref<8x16x16xf32, #tpu.memory_space<vmem>>, %arg2: memref<8x16x16xf32, #tpu.memory_space<vmem>>, %arg3: memref<8x13xf32, #tpu.memory_space<vmem>>, %arg4: memref<8x13xf32, #tpu.memory_space<vmem>>) attributes {dimension_semantics = [#tpu.dimension_semantics<parallel>], iteration_bounds = array<i64: 1>, scalar_prefetch = 0 : i64, scratch_operands = 0 : i64, tpu.core_type = #tpu.core_type<tc>, window_params = [{transform_indices = @transform_0, window_bounds = array<i64: 8, 16, 16>}, {transform_indices = @transform_1, window_bounds = array<i64: 8, 16, 16>}, {transform_indices = @transform_2, window_bounds = array<i64: 8, 13>}, {transform_indices = @transform_3, window_bounds = array<i64: 8, 13>}]} {
    %0 = tpu.iota {dimensions = array<i32: 0>} : vector<16x13xi32>
    %1 = tpu.iota {dimensions = array<i32: 1>} : vector<16x13xi32>
    %2 = arith.cmpi sle, %1, %0 : vector<16x13xi32>
    %c4_i32 = arith.constant 4 : i32
    %3 = vector.broadcast %c4_i32 : i32 to vector<16x13xi32>
    %4 = arith.addi %1, %3 : vector<16x13xi32>
    %5 = arith.cmpi slt, %0, %4 : vector<16x13xi32>
    %6 = arith.andi %2, %5 : vector<16x13xi1>
    %7 = vector.shape_cast %6 : vector<16x13xi1> to vector<1x16x13xi1>
    %c0 = arith.constant 0 : index
    %c0_0 = arith.constant 0 : index
    %c0_1 = arith.constant 0 : index
    %8 = vector.load %arg1[%c0, %c0_0, %c0_1] : memref<8x16x16xf32, #tpu.memory_space<vmem>>, vector<8x16x16xf32>
    %9 = vector.extract_strided_slice %8 {offsets = [0, 0, 0], sizes = [8, 16, 13], strides = [1, 1, 1]} : vector<8x16x16xf32> to vector<8x16x13xf32>
    %10 = vector.extract_strided_slice %8 {offsets = [0, 0, 1], sizes = [8, 16, 13], strides = [1, 1, 1]} : vector<8x16x16xf32> to vector<8x16x13xf32>
    %11 = arith.addf %9, %10 : vector<8x16x13xf32>
    %12 = vector.extract_strided_slice %8 {offsets = [0, 0, 2], sizes = [8, 16, 13], strides = [1, 1, 1]} : vector<8x16x16xf32> to vector<8x16x13xf32>
    %13 = arith.addf %11, %12 : vector<8x16x13xf32>
    %14 = vector.extract_strided_slice %8 {offsets = [0, 0, 3], sizes = [8, 16, 13], strides = [1, 1, 1]} : vector<8x16x16xf32> to vector<8x16x13xf32>
    %15 = arith.addf %13, %14 : vector<8x16x13xf32>
    %cst = arith.constant 0.000000e+00 : f32
    %16 = vector.shape_cast %7 : vector<1x16x13xi1> to vector<1x16x13xi1>
    %17 = vector.broadcast %16 : vector<1x16x13xi1> to vector<8x16x13xi1>
    %18 = vector.broadcast %cst : f32 to vector<8x16x13xf32>
    %19 = arith.select %17, %15, %18 : vector<8x16x13xi1>, vector<8x16x13xf32>
    %cst_2 = arith.constant dense<0.000000e+00> : vector<8x13xf32>
    %20 = vector.multi_reduction <add>, %19, %cst_2 [1] : vector<8x16x13xf32> to vector<8x13xf32>
    %cst_3 = arith.constant 6.250000e-02 : f32
    %21 = vector.broadcast %cst_3 : f32 to vector<8x13xf32>
    %22 = arith.mulf %20, %21 : vector<8x13xf32>
    %c0_4 = arith.constant 0 : index
    %c0_5 = arith.constant 0 : index
    %23 = vector.load %arg3[%c0_4, %c0_5] : memref<8x13xf32, #tpu.memory_space<vmem>>, vector<8x13xf32>
    tpu.vector_store %arg3[%c0_4, %c0_5], %22 {strides = array<i32>} : memref<8x13xf32, #tpu.memory_space<vmem>>, vector<8x13xf32>,
    %c0_6 = arith.constant 0 : index
    %c0_7 = arith.constant 0 : index
    %c0_8 = arith.constant 0 : index
    %24 = vector.load %arg2[%c0_6, %c0_7, %c0_8] : memref<8x16x16xf32, #tpu.memory_space<vmem>>, vector<8x16x16xf32>
    %25 = vector.extract_strided_slice %24 {offsets = [0, 0, 0], sizes = [8, 16, 13], strides = [1, 1, 1]} : vector<8x16x16xf32> to vector<8x16x13xf32>
    %26 = vector.extract_strided_slice %24 {offsets = [0, 0, 1], sizes = [8, 16, 13], strides = [1, 1, 1]} : vector<8x16x16xf32> to vector<8x16x13xf32>
    %27 = arith.addf %25, %26 : vector<8x16x13xf32>
    %28 = vector.extract_strided_slice %24 {offsets = [0, 0, 2], sizes = [8, 16, 13], strides = [1, 1, 1]} : vector<8x16x16xf32> to vector<8x16x13xf32>
    %29 = arith.addf %27, %28 : vector<8x16x13xf32>
    %30 = vector.extract_strided_slice %24 {offsets = [0, 0, 3], sizes = [8, 16, 13], strides = [1, 1, 1]} : vector<8x16x16xf32> to vector<8x16x13xf32>
    %31 = arith.addf %29, %30 : vector<8x16x13xf32>
    %cst_9 = arith.constant 0.000000e+00 : f32
    %32 = vector.shape_cast %7 : vector<1x16x13xi1> to vector<1x16x13xi1>
    %33 = vector.broadcast %32 : vector<1x16x13xi1> to vector<8x16x13xi1>
    %34 = vector.broadcast %cst_9 : f32 to vector<8x16x13xf32>
    %35 = arith.select %33, %31, %34 : vector<8x16x13xi1>, vector<8x16x13xf32>
    %cst_10 = arith.constant dense<0.000000e+00> : vector<8x13xf32>
    %36 = vector.multi_reduction <add>, %35, %cst_10 [1] : vector<8x16x13xf32> to vector<8x13xf32>
    %cst_11 = arith.constant 6.250000e-02 : f32
    %37 = vector.broadcast %cst_11 : f32 to vector<8x13xf32>
    %38 = arith.mulf %36, %37 : vector<8x13xf32>
    %c0_12 = arith.constant 0 : index
    %c0_13 = arith.constant 0 : index
    %39 = vector.load %arg4[%c0_12, %c0_13] : memref<8x13xf32, #tpu.memory_space<vmem>>, vector<8x13xf32>
    tpu.vector_store %arg4[%c0_12, %c0_13], %38 {strides = array<i32>} : memref<8x13xf32, #tpu.memory_space<vmem>>, vector<8x13xf32>,
    return
  }
  func.func @transform_0(%arg0: i32) -> (i32, i32, i32) {
    %c0_i32 = arith.constant 0 : i32
    %c0_i32_0 = arith.constant 0 : i32
    %c0_i32_1 = arith.constant 0 : i32
    return %arg0, %c0_i32, %c0_i32_0 : i32, i32, i32
  }
  func.func @transform_1(%arg0: i32) -> (i32, i32, i32) {
    %c0_i32 = arith.constant 0 : i32
    %c0_i32_0 = arith.constant 0 : i32
    %c0_i32_1 = arith.constant 0 : i32
    return %arg0, %c0_i32, %c0_i32_0 : i32, i32, i32
  }
  func.func @transform_2(%arg0: i32) -> (i32, i32) {
    %c0_i32 = arith.constant 0 : i32
    %c0_i32_0 = arith.constant 0 : i32
    return %arg0, %c0_i32 : i32, i32
  }
  func.func @transform_3(%arg0: i32) -> (i32, i32) {
    %c0_i32 = arith.constant 0 : i32
    %c0_i32_0 = arith.constant 0 : i32
    return %arg0, %c0_i32 : i32, i32
  }
}

</mosaic_0001>

<bundles_post_ra>
// kernel: tpu_custom_call.1
= control target key start
LH: loop header
LB: loop body
LE: loop exit
PB: predicated region body
PF: predicated region fallthrough
CT: control target
= control target key end

     0   :  { %9 = vsyncpa [#allocation3], 0  ;;  %s1455_s0 = inlined_call_operand.hbm [shape: f32[8,16,16], index: 0, kind: input, shape index: {}]   ;;  %s1456_s1 = inlined_call_operand.hbm [shape: f32[8,16,16], index: 1, kind: input, shape index: {}]   ;;  %s1457_s2 = inlined_call_operand.hbm [shape: f32[8,13], index: 2, kind: output, shape index: {0}]   ;;  %s1458_s3 = inlined_call_operand.hbm [shape: f32[8,13], index: 3, kind: output, shape index: {1}]  }
   0x1   :  { %10 = vsyncpa [#allocation6], 0 }
   0x2   :  { %11 = vsyncpa [#allocation4], 0 }
   0x3   :  { %12 = vsyncpa [#allocation9], 0  ;;  %s17_s14 = sshll.u32 %s1455_s0, 4  ;;  %s892_s15 = smov [#allocation2]   ;;  %s18_s14 = int_to_ptr.hbm [resolvable:$true] %s17_s14 }
   0x4   :  { %s19_s16 = sshll.u32 %s892_s15, 4  ;;  %s30_s19 = sshll.u32 %s1456_s1, 4  ;;  %s20_s16 = int_to_ptr.vmem [resolvable:$true] %s19_s16  ;;  %s31_s19 = int_to_ptr.hbm [resolvable:$true] %s30_s19 }
   0x5   :  { %s893_s20 = smov 128   ;;  %s894_s21 = smov 8  }
   0x6   :  { %25 = dma.hbm_to_vmem [thread:$0]  %s18_s14, 2048, %s20_s16, [#allocation3], %s893_s20, %s893_s20, %s894_s21  }
   0x7   :  { %s895_s22 = smov [#allocation5]  }
   0x8   :  { %s32_s23 = sshll.u32 %s895_s22, 4  ;;  %s33_s23 = int_to_ptr.vmem [resolvable:$true] %s32_s23 }
   0x9   :  { %38 = dma.hbm_to_vmem [thread:$0]  %s31_s19, 2048, %s33_s23, [#allocation6], %s893_s20, %s893_s20, %s894_s21  }
   0xa   :  { %884 = dma.done.wait [#allocation3], 2048  }
   0xb   :  { %885 = vsyncadd [#allocation3], 4294965248 }
   0xc   :  { %886 = dma.done.wait [#allocation6], 2048  }
   0xd   :  { %887 = vsyncadd [#allocation6], 4294965248  ;;  %v927_v0 = vld [vmem:[#allocation2 + $0x20] sm:$0xff]  ;;  %v929_v1 = vld [vmem:[#allocation2 + $0x10] sm:$0xff]  ;;  %s896_s0 = smov 127   ;;  %s897_s1 = smov 126  }
   0xe   :  { %v931_v2 = vld [vmem:[#allocation2] sm:$0xff]  ;;  %99 = vrot.lane.b32.xlu2 %v927_v0, %s896_s0  ;;  %95 = vrot.lane.b32.xlu1 %v929_v1, %s896_s0  ;;  %v939_v3 = vld [vmem:[#allocation2 + $0x28] sm:$0xff]  ;;  %v941_v4 = vld [vmem:[#allocation2 + $0x18] sm:$0xff]  ;;  %s898_s24 = smov 125   ;;  %vm303_vm6 = vcmask 105472   ;;  %vm392_vm7 = vcmask 1041409  }
   0xf   :  { %91 = vrot.lane.b32.xlu0 %v931_v2, %s896_s0  ;;  %v943_v5 = vld [vmem:[#allocation2 + $0x8] sm:$0xff]  ;;  %v951_v6 = vld [vmem:[#allocation2 + $0x40] sm:$0xff]  ;;  %v953_v7 = vld [vmem:[#allocation2 + $0x38] sm:$0xff]  ;;  %vm394_vm8 = vcmask 1042434   ;;  %vm396_vm9 = vcmask 1043459   ;;  %vm398_vm10 = vcmask 1044484  }
  0x10   :  { %v955_v8 = vld [vmem:[#allocation2 + $0x30] sm:$0xff]  ;;  %v963_v9 = vld [vmem:[#allocation2 + $0x58] sm:$0xff]  ;;  %v967_v11 = vld [vmem:[#allocation2 + $0x48] sm:$0xff]  ;;  %vm400_vm11 = vcmask 1045509   ;;  %vm402_vm12 = vcmask 1046534   ;;  %vm404_vm13 = vcmask 1047559  }
  0x11   :  { %v965_v10 = vld [vmem:[#allocation2 + $0x50] sm:$0xff]  ;;  %v977_v13 = vld [vmem:[#allocation2 + $0x68] sm:$0xff]  ;;  %v979_v14 = vld [vmem:[#allocation2 + $0x60] sm:$0xff]  ;;  %s752_s27 = sshll.u32 %s1457_s2, 4  ;;  %s899_s28 = smov [#allocation7]   ;;  %s753_s27 = int_to_ptr.hbm [resolvable:$true] %s752_s27 }
  0x12   :  { %v975_v12 = vld [vmem:[#allocation2 + $0x70] sm:$0xff]  ;;  %v987_v15 = vld [vmem:[#allocation2 + $0x78] sm:$0xff]  ;;  %v1065_v26 = vld [vmem:[#allocation5 + $0x8] sm:$0xff]  ;;  %s750_s29 = sshll.u32 %s899_s28, 4  ;;  %s900_s2 = smov [#allocation8]   ;;  %s751_s29 = int_to_ptr.vmem [resolvable:$true] %s750_s29 }
  0x13   :  { %v1063_v25 = vld [vmem:[#allocation5 + $0x10] sm:$0xff]  ;;  %1467 = vst [vmem:[#allocation15_spill] sm:$0xff] %v1065_v26  ;;  %v1067_v27 = vld [vmem:[#allocation5] sm:$0xff]  ;;  %v1082_v33 = vld [vmem:[#allocation5 + $0x28] sm:$0xff]  ;;  %s761_s30 = sshll.u32 %s900_s2, 4  ;;  %s763_s6 = sshll.u32 %s1458_s3, 4  ;;  %s762_s30 = int_to_ptr.vmem [resolvable:$true] %s761_s30  ;;  %s764_s6 = int_to_ptr.hbm [resolvable:$true] %s763_s6 }
  0x14   :  { %1466 = vst [vmem:[#allocation14_spill] sm:$0xff] %v1063_v25  ;;  %v1084_v34 = vld [vmem:[#allocation5 + $0x20] sm:$0xff]  ;;  %v1086_v35 = vld [vmem:[#allocation5 + $0x18] sm:$0xff]  ;;  %v1105_v43 = vld [vmem:[#allocation5 + $0x30] sm:$0xff] }
  0x15   :  { %1468 = vst [vmem:[#allocation16_spill] sm:$0xff] %v1067_v27  ;;  %v1101_v41 = vld [vmem:[#allocation5 + $0x40] sm:$0xff]  ;;  %v1103_v42 = vld [vmem:[#allocation5 + $0x38] sm:$0xff]  ;;  %v1121_v48 = vld [vmem:[#allocation5 + $0x50] sm:$0xff] }
  0x16   :  { %101 = vrot.lane.b32.xlu2 %v939_v3, %s896_s0  ;;  %97 = vrot.lane.b32.xlu1 %v941_v4, %s896_s0  ;;  %1469 = vst [vmem:[#allocation17_spill] sm:$0xff] %v1082_v33  ;;  %v1119_v47 = vld [vmem:[#allocation5 + $0x58] sm:$0xff]  ;;  %v1123_v49 = vld [vmem:[#allocation5 + $0x48] sm:$0xff]  ;;  %v1136_v55 = vld [vmem:[#allocation5 + $0x70] sm:$0xff] }
  0x17   :  { %93 = vrot.lane.b32.xlu0 %v943_v5, %s896_s0  ;;  %1470 = vst [vmem:[#allocation18_spill] sm:$0xff] %v1086_v35  ;;  %v1138_v56 = vld [vmem:[#allocation5 + $0x68] sm:$0xff]  ;;  %v1140_v57 = vld [vmem:[#allocation5 + $0x60] sm:$0xff] }
  0x18   :  { %1471 = vst [vmem:[#allocation19_spill] sm:$0xff] %v1123_v49 }
  0x1e   :  { %107 = vrot.lane.b32.xlu2 %v951_v6, %s896_s0  ;;  %105 = vrot.lane.b32.xlu1 %v953_v7, %s896_s0 }
  0x1f   :  { %103 = vrot.lane.b32.xlu0 %v955_v8, %s896_s0 }
  0x26   :  { %113 = vrot.lane.b32.xlu2 %v963_v9, %s896_s0  ;;  %111 = vrot.lane.b32.xlu1 %v965_v10, %s896_s0 }
  0x27   :  { %109 = vrot.lane.b32.xlu0 %v967_v11, %s896_s0 }
  0x2e   :  { %119 = vrot.lane.b32.xlu2 %v975_v12, %s896_s0  ;;  %117 = vrot.lane.b32.xlu1 %v977_v13, %s896_s0 }
  0x2f   :  { %115 = vrot.lane.b32.xlu0 %v979_v14, %s896_s0 }
  0x36   :  { %157 = vrot.lane.b32.xlu2 %v943_v5, %s897_s1  ;;  %155 = vrot.lane.b32.xlu1 %v931_v2, %s897_s1 }
  0x37   :  { %121 = vrot.lane.b32.xlu0 %v987_v15, %s896_s0 }
  0x3e   :  { %163 = vrot.lane.b32.xlu2 %v927_v0, %s897_s1  ;;  %161 = vrot.lane.b32.xlu1 %v941_v4, %s897_s1 }
  0x3f   :  { %159 = vrot.lane.b32.xlu0 %v929_v1, %s897_s1 }
  0x46   :  { %169 = vrot.lane.b32.xlu2 %v953_v7, %s897_s1  ;;  %167 = vrot.lane.b32.xlu1 %v955_v8, %s897_s1 }
  0x47   :  { %165 = vrot.lane.b32.xlu0 %v939_v3, %s897_s1 }
  0x4e   :  { %175 = vrot.lane.b32.xlu2 %v965_v10, %s897_s1  ;;  %173 = vrot.lane.b32.xlu1 %v967_v11, %s897_s1 }
  0x4f   :  { %171 = vrot.lane.b32.xlu0 %v951_v6, %s897_s1 }
  0x56   :  { %181 = vrot.lane.b32.xlu2 %v977_v13, %s897_s1  ;;  %179 = vrot.lane.b32.xlu1 %v979_v14, %s897_s1 }
  0x57   :  { %177 = vrot.lane.b32.xlu0 %v963_v9, %s897_s1 }
  0x5e   :  { %219 = vrot.lane.b32.xlu2 %v931_v2, %s898_s24  ;;  %185 = vrot.lane.b32.xlu1 %v987_v15, %s897_s1 }
  0x5f   :  { %183 = vrot.lane.b32.xlu0 %v975_v12, %s897_s1 }
  0x66   :  { %225 = vrot.lane.b32.xlu2 %v941_v4, %s898_s24  ;;  %223 = vrot.lane.b32.xlu1 %v929_v1, %s898_s24 }
  0x67   :  { %221 = vrot.lane.b32.xlu0 %v943_v5, %s898_s24 }
  0x68   :  { %v100_v16 = vpop.permute.xlu2 %99 }
  0x69   :  { %v143_v36 = vadd.f32 %v100_v16, %v927_v0 }
  0x6e   :  { %231 = vrot.lane.b32.xlu2 %v955_v8, %s898_s24  ;;  %229 = vrot.lane.b32.xlu1 %v939_v3, %s898_s24 }
  0x6f   :  { %227 = vrot.lane.b32.xlu0 %v927_v0, %s898_s24 }
  0x70   :  { %v1037_v17 = vpop.permute.xlu2 %101 }
  0x76   :  { %237 = vrot.lane.b32.xlu2 %v967_v11, %s898_s24  ;;  %235 = vrot.lane.b32.xlu1 %v951_v6, %s898_s24 }
  0x77   :  { %233 = vrot.lane.b32.xlu0 %v953_v7, %s898_s24 }
  0x78   :  { %v1045_v18 = vpop.permute.xlu2 %107 }
  0x7e   :  { %243 = vrot.lane.b32.xlu2 %v979_v14, %s898_s24  ;;  %241 = vrot.lane.b32.xlu1 %v963_v9, %s898_s24 }
  0x7f   :  { %239 = vrot.lane.b32.xlu0 %v965_v10, %s898_s24 }
  0x80   :  { %v1053_v19 = vpop.permute.xlu2 %113  ;;  %v96_v20 = vpop.permute.xlu1 %95 }
  0x81   :  { %v92_v21 = vpop.permute.xlu0 %91  ;;  %v141_v59 = vadd.f32 %v96_v20, %v929_v1 }
  0x82   :  { %v139_v50 = vadd.f32 %v92_v21, %v931_v2  ;;  %v1152_v2 = vld [vmem:[#allocation5 + $0x78] sm:$0xff] }
  0x86   :  { %249 = vrot.lane.b32.xlu2 %v987_v15, %s898_s24  ;;  %247 = vrot.lane.b32.xlu1 %v975_v12, %s898_s24 }
  0x87   :  { %245 = vrot.lane.b32.xlu0 %v977_v13, %s898_s24 }
  0x88   :  { %v1061_v22 = vpop.permute.xlu2 %119  ;;  %v98_v23 = vpop.permute.xlu1 %97 }
  0x89   :  { %v94_v24 = vpop.permute.xlu0 %93  ;;  %v142_v58 = vadd.f32 %v98_v23, %v941_v4  ;;  %v47_v23 = vlaneseq }
  0x8a   :  { %v140_v28 = vadd.f32 %v94_v24, %v943_v5 }
  0x8e   :  { %444 = vrot.lane.b32.xlu2 %v1063_v25, %s896_s0  ;;  %442 = vrot.lane.b32.xlu1 %v1065_v26, %s896_s0 }
  0x8f   :  { %440 = vrot.lane.b32.xlu0 %v1067_v27, %s896_s0 }
  0x90   :  { %v1076_v29 = vpop.permute.xlu1 %105  ;;  %v158_v30 = vpop.permute.xlu2 %157 }
  0x91   :  { %v1078_v31 = vadd.f32 %v158_v30, %v140_v28  ;;  %v1080_v32 = vpop.permute.xlu0 %103 }
  0x96   :  { %450 = vrot.lane.b32.xlu2 %v1082_v33, %s896_s0  ;;  %448 = vrot.lane.b32.xlu1 %v1084_v34, %s896_s0 }
  0x97   :  { %446 = vrot.lane.b32.xlu0 %v1086_v35, %s896_s0 }
  0x98   :  { %v1095_v37 = vpop.permute.xlu1 %111  ;;  %v164_v38 = vpop.permute.xlu2 %163 }
  0x99   :  { %v1097_v39 = vadd.f32 %v164_v38, %v143_v36  ;;  %v1099_v40 = vpop.permute.xlu0 %109  ;;  %v51_v36 = vand.u32 127, %v47_v23  ;;  %v48_v38 = vshrl.u32 %v47_v23, 7 }
  0x9b   :  { %vm52_vm2 = vcmp.le.s32.totalorder %v51_v36, %v48_v38 }
  0x9e   :  { %456 = vrot.lane.b32.xlu2 %v1101_v41, %s896_s0  ;;  %454 = vrot.lane.b32.xlu1 %v1103_v42, %s896_s0 }
  0x9f   :  { %452 = vrot.lane.b32.xlu0 %v1105_v43, %s896_s0 }
  0xa0   :  { %v1113_v44 = vpop.permute.xlu1 %117  ;;  %v1115_v45 = vpop.permute.xlu2 %169 }
  0xa1   :  { %v1117_v46 = vpop.permute.xlu0 %115 }
  0xa6   :  { %462 = vrot.lane.b32.xlu2 %v1119_v47, %s896_s0  ;;  %460 = vrot.lane.b32.xlu1 %v1121_v48, %s896_s0 }
  0xa7   :  { %458 = vrot.lane.b32.xlu0 %v1123_v49, %s896_s0 }
  0xa8   :  { %v1132_v51 = vpop.permute.xlu2 %175  ;;  %v156_v52 = vpop.permute.xlu1 %155 }
  0xa9   :  { %v203_v53 = vadd.f32 %v156_v52, %v139_v50  ;;  %v1134_v54 = vpop.permute.xlu0 %121  ;;  %v49_v50 = vadd.s32 8, %v48_v38  ;;  %v54_v52 = vadd.s32 4, %v51_v36 }
  0xab   :  { %vm53_vm0 = vcmp.le.s32.totalorder %v51_v36, %v49_v50  ;;  %vm56_vm1 = vcmp.lt.s32.totalorder %v49_v50, %v54_v52  ;;  %vm55_vm3 = vcmp.lt.s32.totalorder %v48_v38, %v54_v52 }
  0xac   :  { %vm1192_vm4 = vmand %vm53_vm0, %vm56_vm1 }
  0xad   :  { %vm1200_vm5 = vmand %vm52_vm2, %vm55_vm3 }
  0xae   :  { %468 = vrot.lane.b32.xlu2 %v1136_v55, %s896_s0  ;;  %466 = vrot.lane.b32.xlu1 %v1138_v56, %s896_s0 }
  0xaf   :  { %464 = vrot.lane.b32.xlu0 %v1140_v57, %s896_s0 }
  0xb0   :  { %v1150_v60 = vpop.permute.xlu2 %181  ;;  %v162_v61 = vpop.permute.xlu1 %161 }
  0xb1   :  { %1472 = vst [vmem:[#allocation20_spill] sm:$0xff] %v1150_v60  ;;  %v206_v62 = vadd.f32 %v162_v61, %v142_v58  ;;  %v160_v63 = vpop.permute.xlu0 %159 }
  0xb2   :  { %v205_v0 = vadd.f32 %v160_v63, %v141_v59 }
  0xb6   :  { %506 = vrot.lane.b32.xlu2 %v1065_v26, %s897_s1  ;;  %504 = vrot.lane.b32.xlu1 %v1067_v27, %s897_s1 }
  0xb7   :  { %470 = vrot.lane.b32.xlu0 %v1152_v2, %s896_s0 }
  0xb8   :  { %v220_v4 = vpop.permute.xlu2 %219  ;;  %v1160_v5 = vpop.permute.xlu1 %167 }
  0xb9   :  { %v166_v1 = vpop.permute.xlu0 %165  ;;  %v267_v23 = vadd.f32 %v220_v4, %v203_v53 }
  0xbb   :  { %v287_v38 = vsel %vm1200_vm5, %v267_v23, 0.0 }
  0xbe   :  { %512 = vrot.lane.b32.xlu2 %v1084_v34, %s897_s1  ;;  %510 = vrot.lane.b32.xlu1 %v1086_v35, %s897_s1 }
  0xbf   :  { %508 = vrot.lane.b32.xlu0 %v1063_v25, %s897_s1 }
  0xc0   :  { %v226_v16 = vpop.permute.xlu2 %225  ;;  %v174_v20 = vpop.permute.xlu1 %173 }
  0xc1   :  { %v1168_v21 = vpop.permute.xlu0 %171  ;;  %v270_v63 = vadd.f32 %v226_v16, %v206_v62 }
  0xc3   :  { %v290_v62 = vsel %vm1192_vm4, %v270_v63, 0.0  ;;  %v304_v63 = vsel %vm303_vm6, %v287_v38, 0.0 }
  0xc6   :  { %518 = vrot.lane.b32.xlu2 %v1103_v42, %s897_s1  ;;  %516 = vrot.lane.b32.xlu1 %v1105_v43, %s897_s1 }
  0xc7   :  { %514 = vrot.lane.b32.xlu0 %v1082_v33, %s897_s1 }
  0xc8   :  { %v1176_v24 = vpop.permute.xlu2 %231  ;;  %v1178_v28 = vpop.permute.xlu1 %179 }
  0xc9   :  { %v1180_v30 = vpop.permute.xlu0 %177 }
  0xce   :  { %568 = vrot.lane.b32.xlu2 %v1067_v27, %s898_s24  ;;  %522 = vrot.lane.b32.xlu1 %v1123_v49, %s897_s1 }
  0xcf   :  { %520 = vrot.lane.b32.xlu0 %v1101_v41, %s897_s1 }
  0xd0   :  { %v238_v58 = vpop.permute.xlu2 %237  ;;  %v1188_v59 = vpop.permute.xlu1 %185 }
  0xd1   :  { %v1190_v61 = vpop.permute.xlu0 %183 }
  0xd6   :  { %574 = vrot.lane.b32.xlu2 %v1086_v35, %s898_s24  ;;  %572 = vrot.lane.b32.xlu1 %v1063_v25, %s898_s24  ;;  %v314_v25 = vsel %vm303_vm6, %v290_v62, 0.0 }
  0xd7   :  { %570 = vrot.lane.b32.xlu0 %v1065_v26, %s898_s24 }
  0xd8   :  { %v1206_v36 = vpop.permute.xlu2 %243  ;;  %v224_v53 = vpop.permute.xlu1 %223 }
  0xd9   :  { %v269_v4 = vadd.f32 %v224_v53, %v205_v0  ;;  %v222_v16 = vpop.permute.xlu0 %221  ;;  %v144_v0 = vadd.f32 %v1037_v17, %v939_v3  ;;  %v148_v3 = vadd.f32 %v1099_v40, %v967_v11 }
  0xda   :  { %v268_v50 = vadd.f32 %v222_v16, %v1078_v31 }
  0xdb   :  { %v289_v52 = vsel %vm1200_vm5, %v269_v4, 0.0  ;;  %v208_v31 = vadd.f32 %v166_v1, %v144_v0 }
  0xdc   :  { %v313_v35 = vsel %vm303_vm6, %v289_v52, 0.0  ;;  %v288_v26 = vsel %vm1192_vm4, %v268_v50, 0.0  ;;  %v212_v50 = vadd.f32 %v174_v20, %v148_v3  ;;  %v150_v3 = vadd.f32 %v1053_v19, %v963_v9 }
  0xdd   :  { %v315_v53 = vadd.f32 %v314_v25, %v313_v35  ;;  %v305_v23 = vsel %vm303_vm6, %v288_v26, 0.0  ;;  %v145_v26 = vadd.f32 %v1080_v32, %v955_v8  ;;  %v147_v32 = vadd.f32 %v1045_v18, %v951_v6 }
  0xde   :  { %v306_v49 = vadd.f32 %v305_v23, %v304_v63  ;;  %524 = vrot.lane.b32.xlu2 %v1121_v48, %s897_s1  ;;  %578 = vrot.lane.b32.xlu1 %v1082_v33, %s898_s24  ;;  %v276_v40 = vadd.f32 %v238_v58, %v212_v50 }
  0xdf   :  { %v316_v62 = vrot.slane %v315_v53, 4  ;;  %576 = vrot.lane.b32.xlu0 %v1084_v34, %s898_s24  ;;  %v209_v0 = vadd.f32 %v1160_v5, %v145_v26  ;;  %v211_v58 = vadd.f32 %v1168_v21, %v147_v32 }
  0xe0   :  { %v307_v17 = vrot.slane %v306_v49, 4  ;;  %v1231_v4 = vpop.permute.xlu2 %249  ;;  %v230_v25 = vpop.permute.xlu1 %229 }
  0xe1   :  { %v317_v35 = vadd.f32 %v316_v62, %v315_v53  ;;  %v272_v16 = vadd.f32 %v230_v25, %v208_v31  ;;  %v228_v38 = vpop.permute.xlu0 %227  ;;  %v273_v20 = vadd.f32 %v1176_v24, %v209_v0 }
  0xe2   :  { %v308_v52 = vadd.f32 %v307_v17, %v306_v49  ;;  %v271_v1 = vadd.f32 %v228_v38, %v1097_v39  ;;  %v146_v49 = vadd.f32 %v1076_v29, %v953_v7  ;;  %v296_v7 = vsel %vm1192_vm4, %v276_v40, 0.0 }
  0xe3   :  { %v318_v63 = vrot.slane %v317_v35, 2  ;;  %v292_v11 = vsel %vm1192_vm4, %v272_v16, 0.0  ;;  %v293_v26 = vsel %vm1200_vm5, %v273_v20, 0.0  ;;  %v341_v38 = vsel %vm303_vm6, %v296_v7, 0.0 }
  0xe4   :  { %v309_v23 = vrot.slane %v308_v52, 2  ;;  %v323_v33 = vsel %vm303_vm6, %v292_v11, 0.0  ;;  %v291_v8 = vsel %vm1200_vm5, %v271_v1, 0.0  ;;  %v210_v6 = vadd.f32 %v1115_v45, %v146_v49 }
  0xe5   :  { %v319_v39 = vadd.f32 %v318_v63, %v317_v35  ;;  %v322_v5 = vsel %vm303_vm6, %v291_v8, 0.0  ;;  %v149_v63 = vadd.f32 %v1095_v37, %v965_v10  ;;  %v331_v11 = vsel %vm303_vm6, %v293_v26, 0.0 }
  0xe6   :  { %v310_v53 = vadd.f32 %v309_v23, %v308_v52  ;;  %v324_v31 = vadd.f32 %v323_v33, %v322_v5  ;;  %582 = vrot.lane.b32.xlu2 %v1103_v42, %s898_s24  ;;  %580 = vrot.lane.b32.xlu1 %v1105_v43, %s898_s24  ;;  %v214_v10 = vadd.f32 %v1180_v30, %v150_v3 }
  0xe7   :  { %v320_v62 = vrot.slane %v319_v39, 1  ;;  %526 = vrot.lane.b32.xlu0 %v1119_v47, %s897_s1  ;;  %v151_v5 = vadd.f32 %v1117_v46, %v979_v14  ;;  %v213_v20 = vadd.f32 %v1132_v51, %v149_v63 }
  0xe8   :  { %v311_v18 = vrot.slane %v310_v53, 1  ;;  %v325_v29 = vrot.slane %v324_v31, 4  ;;  %v1258_v33 = vpop.permute.xlu2 %444  ;;  %v236_v24 = vpop.permute.xlu1 %235 }
  0xe9   :  { %v321_v17 = vadd.f32 %v320_v62, %v319_v39  ;;  %v275_v25 = vadd.f32 %v236_v24, %v211_v58  ;;  %v234_v21 = vpop.permute.xlu0 %233  ;;  %v154_v39 = vadd.f32 %v1134_v54, %v987_v15 }
  0xea   :  { %v312_v35 = vadd.f32 %v311_v18, %v310_v53  ;;  %v326_v16 = vadd.f32 %v325_v29, %v324_v31  ;;  %v274_v45 = vadd.f32 %v234_v21, %v210_v6  ;;  %v153_v6 = vadd.f32 %v1061_v22, %v975_v12 }
  0xeb   :  { %v377_v50 = vmul.f32 0.0625, %v321_v17  ;;  %v295_v52 = vsel %vm1200_vm5, %v275_v25, 0.0  ;;  %v218_v15 = vadd.f32 %v1188_v59, %v154_v39  ;;  %v215_v18 = vadd.f32 %v1178_v28, %v151_v5 }
  0xec   :  { %v376_v1 = vmul.f32 0.0625, %v312_v35  ;;  %v327_v0 = vrot.slane %v326_v16, 2  ;;  %v340_v9 = vsel %vm303_vm6, %v295_v52, 0.0  ;;  %v294_v19 = vsel %vm1192_vm4, %v274_v45, 0.0 }
  0xed   :  { %v342_v40 = vadd.f32 %v341_v38, %v340_v9  ;;  %v332_v23 = vsel %vm303_vm6, %v294_v19, 0.0  ;;  %v282_v46 = vadd.f32 %v1231_v4, %v218_v15  ;;  %v152_v28 = vadd.f32 %v1113_v44, %v977_v13  ;;  %v1477_v13 = vld [vmem:[#allocation19_spill] sm:$0xff]  ;;  %v1478_v44 = vld [vmem:[#allocation20_spill] sm:$0xff] }
  0xee   :  { %v393_v8 = vsel %vm392_vm7, %v377_v50, %v376_v1  ;;  %v328_v32 = vadd.f32 %v327_v0, %v326_v16  ;;  %v333_v49 = vadd.f32 %v332_v23, %v331_v11  ;;  %584 = vrot.lane.b32.xlu2 %v1101_v41, %s898_s24  ;;  %530 = vrot.lane.b32.xlu1 %v1138_v56, %s897_s1 }
  0xef   :  { %v343_v37 = vrot.slane %v342_v40, 4  ;;  %528 = vrot.lane.b32.xlu0 %v1140_v57, %s897_s1  ;;  %v279_v59 = vadd.f32 %v1206_v36, %v215_v18  ;;  %v217_v45 = vadd.f32 %v1190_v61, %v153_v6  ;;  %v216_v36 = vadd.f32 %v1478_v44, %v152_v28 }
  0xf0   :  { %v329_v53 = vrot.slane %v328_v32, 1  ;;  %v334_v31 = vrot.slane %v333_v49, 4  ;;  %v1287_v58 = vpop.permute.xlu2 %450  ;;  %v242_v62 = vpop.permute.xlu1 %241  ;;  %v302_v50 = vsel %vm1192_vm4, %v282_v46, 0.0 }
  0xf1   :  { %v344_v54 = vadd.f32 %v343_v37, %v342_v40  ;;  %v278_v30 = vadd.f32 %v242_v62, %v214_v10  ;;  %v240_v7 = vpop.permute.xlu0 %239  ;;  %v299_v19 = vsel %vm1200_vm5, %v279_v59, 0.0 }
  0xf2   :  { %v330_v29 = vadd.f32 %v329_v53, %v328_v32  ;;  %v335_v24 = vadd.f32 %v334_v31, %v333_v49  ;;  %v277_v14 = vadd.f32 %v240_v7, %v213_v20  ;;  %v368_v32 = vsel %vm303_vm6, %v302_v50, 0.0 }
  0xf3   :  { %v345_v51 = vrot.slane %v344_v54, 2  ;;  %v298_v3 = vsel %vm1192_vm4, %v278_v30, 0.0  ;;  %v358_v53 = vsel %vm303_vm6, %v299_v19, 0.0 }
  0xf4   :  { %v378_v17 = vmul.f32 0.0625, %v330_v29  ;;  %v336_v25 = vrot.slane %v335_v24, 2  ;;  %v350_v12 = vsel %vm303_vm6, %v298_v3, 0.0  ;;  %v297_v22 = vsel %vm1200_vm5, %v277_v14, 0.0 }
  0xf5   :  { %v346_v21 = vadd.f32 %v345_v51, %v344_v54  ;;  %v349_v4 = vsel %vm303_vm6, %v297_v22, 0.0 }
  0xf6   :  { %v395_v26 = vsel %vm394_vm8, %v378_v17, %v393_v8  ;;  %v337_v35 = vadd.f32 %v336_v25, %v335_v24  ;;  %v351_v16 = vadd.f32 %v350_v12, %v349_v4  ;;  %534 = vrot.lane.b32.xlu2 %v1152_v2, %s897_s1  ;;  %532 = vrot.lane.b32.xlu1 %v1136_v55, %s897_s1 }
  0xf7   :  { %v347_v38 = vrot.slane %v346_v21, 1  ;;  %586 = vrot.lane.b32.xlu0 %v1477_v13, %s898_s24 }
  0xf8   :  { %v338_v52 = vrot.slane %v337_v35, 1  ;;  %v352_v1 = vrot.slane %v351_v16, 4  ;;  %v1314_v0 = vpop.permute.xlu2 %456  ;;  %v248_v9 = vpop.permute.xlu1 %247 }
  0xf9   :  { %v348_v63 = vadd.f32 %v347_v38, %v346_v21  ;;  %v281_v11 = vadd.f32 %v248_v9, %v217_v45  ;;  %v246_v61 = vpop.permute.xlu0 %245 }
  0xfa   :  { %v339_v40 = vadd.f32 %v338_v52, %v337_v35  ;;  %v353_v23 = vadd.f32 %v352_v1, %v351_v16  ;;  %v280_v8 = vadd.f32 %v246_v61, %v216_v36  ;;  %v1479_v1 = vld [vmem:[#allocation15_spill] sm:$0xff] }
  0xfb   :  { %v380_v49 = vmul.f32 0.0625, %v348_v63  ;;  %v301_v39 = vsel %vm1200_vm5, %v281_v11, 0.0 }
  0xfc   :  { %v379_v10 = vmul.f32 0.0625, %v339_v40  ;;  %v354_v37 = vrot.slane %v353_v23, 2  ;;  %v367_v5 = vsel %vm303_vm6, %v301_v39, 0.0  ;;  %v300_v20 = vsel %vm1192_vm4, %v280_v8, 0.0 }
  0xfd   :  { %v369_v31 = vadd.f32 %v368_v32, %v367_v5  ;;  %v359_v62 = vsel %vm303_vm6, %v300_v20, 0.0  ;;  %v1480_v20 = vld [vmem:[#allocation16_spill] sm:$0xff] }
  0xfe   :  { %v355_v6 = vadd.f32 %v354_v37, %v353_v23  ;;  %v360_v15 = vadd.f32 %v359_v62, %v358_v53  ;;  %592 = vrot.lane.b32.xlu2 %v1140_v57, %s898_s24  ;;  %590 = vrot.lane.b32.xlu1 %v1119_v47, %s898_s24  ;;  %v397_v54 = vsel %vm396_vm9, %v379_v10, %v395_v26 }
  0xff   :  { %v370_v30 = vrot.slane %v369_v31, 4  ;;  %588 = vrot.lane.b32.xlu0 %v1121_v48, %s898_s24  ;;  %v399_v7 = vsel %vm398_vm10, %v380_v49, %v397_v54  ;;  %v1481_v54 = vld [vmem:[#allocation18_spill] sm:$0xff] }
 0x100   :  { %v356_v18 = vrot.slane %v355_v6, 1  ;;  %v361_v29 = vrot.slane %v360_v15, 4  ;;  %v1334_v24 = vpop.permute.xlu2 %462  ;;  %v443_v14 = vpop.permute.xlu1 %442 }
 0x101   :  { %v371_v46 = vadd.f32 %v370_v30, %v369_v31  ;;  %v441_v51 = vpop.permute.xlu0 %440  ;;  %v489_v9 = vadd.f32 %v443_v14, %v1479_v1  ;;  %v1482_v30 = vld [vmem:[#allocation14_spill] sm:$0xff]  ;;  %v1483_v1 = vld [vmem:[#allocation17_spill] sm:$0xff] }
 0x102   :  { %v357_v3 = vadd.f32 %v356_v18, %v355_v6  ;;  %v362_v17 = vadd.f32 %v361_v29, %v360_v15  ;;  %v488_v53 = vadd.f32 %v441_v51, %v1480_v20 }
 0x103   :  { %v372_v25 = vrot.slane %v371_v46, 2 }
 0x104   :  { %v381_v12 = vmul.f32 0.0625, %v357_v3  ;;  %v363_v22 = vrot.slane %v362_v17, 2 }
 0x105   :  { %v373_v28 = vadd.f32 %v372_v25, %v371_v46 }
 0x106   :  { %v364_v59 = vadd.f32 %v363_v22, %v362_v17  ;;  %598 = vrot.lane.b32.xlu2 %v1152_v2, %s898_s24  ;;  %596 = vrot.lane.b32.xlu1 %v1136_v55, %s898_s24  ;;  %v401_v21 = vsel %vm400_vm11, %v381_v12, %v399_v7  ;;  %v490_v7 = vadd.f32 %v1258_v33, %v1482_v30 }
 0x107   :  { %v374_v4 = vrot.slane %v373_v28, 1  ;;  %594 = vrot.lane.b32.xlu0 %v1138_v56, %s898_s24 }
 0x108   :  { %v365_v26 = vrot.slane %v364_v59, 1  ;;  %v1343_v35 = vpop.permute.xlu2 %468  ;;  %v449_v16 = vpop.permute.xlu1 %448 }
 0x109   :  { %v375_v45 = vadd.f32 %v374_v4, %v373_v28  ;;  %v447_v38 = vpop.permute.xlu0 %446  ;;  %v492_v23 = vadd.f32 %v449_v16, %v1084_v34 }
 0x10a   :  { %v366_v44 = vadd.f32 %v365_v26, %v364_v59  ;;  %v491_v34 = vadd.f32 %v447_v38, %v1481_v54 }
 0x10b   :  { %v383_v36 = vmul.f32 0.0625, %v375_v45 }
 0x10c   :  { %v382_v50 = vmul.f32 0.0625, %v366_v44 }
 0x10e   :  { %v403_v52 = vsel %vm402_vm12, %v382_v50, %v401_v21 }
 0x10f   :  { %v405_v19 = vsel %vm404_vm13, %v383_v36, %v403_v52 }
 0x110   :  { %v507_v63 = vpop.permute.xlu2 %506  ;;  %v455_v11 = vpop.permute.xlu1 %454  ;;  %407 = vst.msk [vmem:[#allocation7] sm:$0xff] %vm303_vm6, %v405_v19 }
 0x111   :  { %v553_v61 = vadd.f32 %v507_v63, %v489_v9  ;;  %v453_v40 = vpop.permute.xlu0 %452  ;;  %755 = dma.vmem_to_hbm [thread:$0]  %s751_s29, 128, %s753_s27, [#allocation4]   ;;  %v493_v9 = vadd.f32 %v1287_v58, %v1483_v1 }
 0x118   :  { %v513_v8 = vpop.permute.xlu2 %512  ;;  %v1353_v32 = vpop.permute.xlu1 %460 }
 0x119   :  { %v556_v49 = vadd.f32 %v513_v8, %v492_v23  ;;  %v1355_v39 = vpop.permute.xlu0 %458 }
 0x120   :  { %v1357_v10 = vpop.permute.xlu1 %466  ;;  %v519_v37 = vpop.permute.xlu2 %518 }
 0x121   :  { %v1359_v5 = vpop.permute.xlu0 %464 }
 0x128   :  { %v505_v31 = vpop.permute.xlu1 %504  ;;  %v569_v15 = vpop.permute.xlu2 %568 }
 0x129   :  { %v552_v62 = vadd.f32 %v505_v31, %v488_v53  ;;  %v1362_v6 = vpop.permute.xlu0 %470 }
 0x12b   :  { %v616_v59 = vadd.f32 %v569_v15, %v552_v62  ;;  %v495_v62 = vadd.f32 %v455_v11, %v1103_v42 }
 0x12d   :  { %v632_v45 = vsel %vm1200_vm5, %v616_v59, 0.0 }
 0x12e   :  { %v648_v63 = vsel %vm303_vm6, %v632_v45, 0.0 }
 0x130   :  { %v511_v18 = vpop.permute.xlu1 %510  ;;  %v575_v3 = vpop.permute.xlu2 %574 }
 0x131   :  { %v555_v29 = vadd.f32 %v511_v18, %v491_v34  ;;  %v509_v14 = vpop.permute.xlu0 %508  ;;  %v559_v18 = vadd.f32 %v519_v37, %v495_v62 }
 0x132   :  { %v554_v46 = vadd.f32 %v509_v14, %v490_v7 }
 0x133   :  { %v619_v28 = vadd.f32 %v575_v3, %v555_v29 }
 0x135   :  { %v635_v4 = vsel %vm1192_vm4, %v619_v28, 0.0  ;;  %v494_v28 = vadd.f32 %v453_v40, %v1105_v43 }
 0x136   :  { %v658_v50 = vsel %vm303_vm6, %v635_v4, 0.0 }
 0x138   :  { %v517_v17 = vpop.permute.xlu1 %516  ;;  %v1367_v12 = vpop.permute.xlu2 %524 }
 0x139   :  { %v515_v25 = vpop.permute.xlu0 %514  ;;  %v558_v37 = vadd.f32 %v517_v17, %v494_v28 }
 0x140   :  { %v1369_v51 = vpop.permute.xlu1 %522  ;;  %v583_v33 = vpop.permute.xlu2 %582 }
 0x141   :  { %v1371_v22 = vpop.permute.xlu0 %520  ;;  %v623_v42 = vadd.f32 %v583_v33, %v559_v18 }
 0x148   :  { %v573_v21 = vpop.permute.xlu1 %572  ;;  %v585_v29 = vpop.permute.xlu2 %584 }
 0x149   :  { %v618_v26 = vadd.f32 %v573_v21, %v554_v46  ;;  %v571_v16 = vpop.permute.xlu0 %570 }
 0x14a   :  { %v617_v38 = vadd.f32 %v571_v16, %v553_v61  ;;  %v557_v61 = vadd.f32 %v515_v25, %v493_v9 }
 0x14b   :  { %v634_v44 = vsel %vm1200_vm5, %v618_v26, 0.0 }
 0x14c   :  { %v657_v36 = vsel %vm303_vm6, %v634_v44, 0.0  ;;  %v633_v52 = vsel %vm1192_vm4, %v617_v38, 0.0  ;;  %v639_v38 = vsel %vm1192_vm4, %v623_v42, 0.0 }
 0x14d   :  { %v659_v19 = vadd.f32 %v658_v50, %v657_v36  ;;  %v649_v23 = vsel %vm303_vm6, %v633_v52, 0.0  ;;  %v676_v33 = vsel %vm303_vm6, %v639_v38, 0.0 }
 0x14e   :  { %v650_v8 = vadd.f32 %v649_v23, %v648_v63 }
 0x14f   :  { %v660_v20 = vrot.slane %v659_v19, 4 }
 0x150   :  { %v651_v53 = vrot.slane %v650_v8, 4  ;;  %v579_v31 = vpop.permute.xlu1 %578  ;;  %v535_v63 = vpop.permute.xlu2 %534 }
 0x151   :  { %v661_v15 = vadd.f32 %v660_v20, %v659_v19  ;;  %v621_v54 = vadd.f32 %v579_v31, %v557_v61  ;;  %v577_v34 = vpop.permute.xlu0 %576 }
 0x152   :  { %v652_v30 = vadd.f32 %v651_v53, %v650_v8  ;;  %v620_v7 = vadd.f32 %v577_v34, %v556_v49 }
 0x153   :  { %v662_v58 = vrot.slane %v661_v15, 2  ;;  %v637_v14 = vsel %vm1192_vm4, %v621_v54, 0.0  ;;  %v496_v54 = vadd.f32 %v1314_v0, %v1101_v41 }
 0x154   :  { %v653_v46 = vrot.slane %v652_v30, 2  ;;  %v667_v3 = vsel %vm303_vm6, %v637_v14, 0.0  ;;  %v636_v25 = vsel %vm1200_vm5, %v620_v7, 0.0  ;;  %v497_v14 = vadd.f32 %v1355_v39, %v1477_v13 }
 0x155   :  { %v663_v11 = vadd.f32 %v662_v58, %v661_v15  ;;  %v666_v59 = vsel %vm303_vm6, %v636_v25, 0.0  ;;  %v560_v7 = vadd.f32 %v1371_v22, %v496_v54  ;;  %v499_v13 = vadd.f32 %v1334_v24, %v1119_v47 }
 0x156   :  { %v654_v21 = vadd.f32 %v653_v46, %v652_v30  ;;  %v668_v49 = vadd.f32 %v667_v3, %v666_v59  ;;  %v561_v42 = vadd.f32 %v1369_v51, %v497_v14 }
 0x157   :  { %v664_v4 = vrot.slane %v663_v11, 1  ;;  %v624_v46 = vadd.f32 %v585_v29, %v560_v7 }
 0x158   :  { %v655_v26 = vrot.slane %v654_v21, 1  ;;  %v669_v16 = vrot.slane %v668_v49, 4  ;;  %v581_v45 = vpop.permute.xlu1 %580  ;;  %v593_v25 = vpop.permute.xlu2 %592 }
 0x159   :  { %v665_v44 = vadd.f32 %v664_v4, %v663_v11  ;;  %v622_v36 = vadd.f32 %v581_v45, %v558_v37  ;;  %v527_v50 = vpop.permute.xlu0 %526  ;;  %v640_v41 = vsel %vm1200_vm5, %v624_v46, 0.0  ;;  %v498_v37 = vadd.f32 %v1353_v32, %v1121_v48 }
 0x15a   :  { %v656_v52 = vadd.f32 %v655_v26, %v654_v21  ;;  %v670_v1 = vadd.f32 %v669_v16, %v668_v49  ;;  %v684_v39 = vsel %vm303_vm6, %v640_v41, 0.0  ;;  %v563_v26 = vadd.f32 %v527_v50, %v499_v13 }
 0x15b   :  { %v721_v43 = vmul.f32 0.0625, %v665_v44  ;;  %v638_v40 = vsel %vm1200_vm5, %v622_v36, 0.0  ;;  %v500_v16 = vadd.f32 %v1359_v5, %v1140_v57  ;;  %v503_v45 = vadd.f32 %v1362_v6, %v1152_v2 }
 0x15c   :  { %v720_v9 = vmul.f32 0.0625, %v656_v52  ;;  %v671_v17 = vrot.slane %v670_v1, 2  ;;  %v675_v19 = vsel %vm303_vm6, %v638_v40, 0.0  ;;  %v562_v38 = vadd.f32 %v1367_v12, %v498_v37 }
 0x15d   :  { %v677_v23 = vadd.f32 %v676_v33, %v675_v19  ;;  %v502_v5 = vadd.f32 %v1343_v35, %v1136_v55  ;;  %v501_v12 = vadd.f32 %v1357_v10, %v1138_v56 }
 0x15e   :  { %v736_v8 = vsel %vm392_vm7, %v721_v43, %v720_v9  ;;  %v672_v61 = vadd.f32 %v671_v17, %v670_v1  ;;  %v567_v1 = vadd.f32 %v535_v63, %v503_v45 }
 0x15f   :  { %v678_v20 = vrot.slane %v677_v23, 4 }
 0x160   :  { %v673_v53 = vrot.slane %v672_v61, 1  ;;  %v531_v31 = vpop.permute.xlu1 %530  ;;  %v599_v44 = vpop.permute.xlu2 %598 }
 0x161   :  { %v679_v62 = vadd.f32 %v678_v20, %v677_v23  ;;  %v529_v15 = vpop.permute.xlu0 %528  ;;  %v631_v32 = vadd.f32 %v599_v44, %v567_v1 }
 0x162   :  { %v674_v34 = vadd.f32 %v673_v53, %v672_v61  ;;  %v564_v43 = vadd.f32 %v529_v15, %v500_v16 }
 0x163   :  { %v680_v30 = vrot.slane %v679_v62, 2  ;;  %v647_v23 = vsel %vm1192_vm4, %v631_v32, 0.0 }
 0x164   :  { %v722_v18 = vmul.f32 0.0625, %v674_v34  ;;  %v628_v9 = vadd.f32 %v593_v25, %v564_v43  ;;  %v712_v56 = vsel %vm303_vm6, %v647_v23, 0.0 }
 0x165   :  { %v681_v58 = vadd.f32 %v680_v30, %v679_v62 }
 0x166   :  { %v737_v3 = vsel %vm394_vm8, %v722_v18, %v736_v8  ;;  %v565_v8 = vadd.f32 %v531_v31, %v501_v12  ;;  %v644_v55 = vsel %vm1200_vm5, %v628_v9, 0.0 }
 0x167   :  { %v682_v28 = vrot.slane %v681_v58, 1  ;;  %v702_v14 = vsel %vm303_vm6, %v644_v55, 0.0 }
 0x168   :  { %v533_v11 = vpop.permute.xlu1 %532 }
 0x169   :  { %v683_v59 = vadd.f32 %v682_v28, %v681_v58  ;;  %v587_v21 = vpop.permute.xlu0 %586  ;;  %v566_v63 = vadd.f32 %v533_v11, %v502_v5 }
 0x16a   :  { %v625_v0 = vadd.f32 %v587_v21, %v561_v42 }
 0x16b   :  { %v723_v22 = vmul.f32 0.0625, %v683_v59 }
 0x16c   :  { %v641_v49 = vsel %vm1192_vm4, %v625_v0, 0.0 }
 0x16d   :  { %v685_v29 = vsel %vm303_vm6, %v641_v49, 0.0  ;;  %v738_v51 = vsel %vm396_vm9, %v723_v22, %v737_v3 }
 0x16e   :  { %v686_v4 = vadd.f32 %v685_v29, %v684_v39 }
 0x170   :  { %v687_v47 = vrot.slane %v686_v4, 4  ;;  %v591_v24 = vpop.permute.xlu1 %590 }
 0x171   :  { %v627_v36 = vadd.f32 %v591_v24, %v563_v26  ;;  %v589_v52 = vpop.permute.xlu0 %588 }
 0x172   :  { %v688_v40 = vadd.f32 %v687_v47, %v686_v4  ;;  %v626_v33 = vadd.f32 %v589_v52, %v562_v38 }
 0x173   :  { %v643_v48 = vsel %vm1192_vm4, %v627_v36, 0.0 }
 0x174   :  { %v689_v50 = vrot.slane %v688_v40, 2  ;;  %v694_v57 = vsel %vm303_vm6, %v643_v48, 0.0  ;;  %v642_v2 = vsel %vm1200_vm5, %v626_v33, 0.0 }
 0x175   :  { %v693_v6 = vsel %vm303_vm6, %v642_v2, 0.0 }
 0x176   :  { %v690_v17 = vadd.f32 %v689_v50, %v688_v40  ;;  %v695_v19 = vadd.f32 %v694_v57, %v693_v6 }
 0x178   :  { %v691_v61 = vrot.slane %v690_v17, 1  ;;  %v696_v20 = vrot.slane %v695_v19, 4  ;;  %v597_v53 = vpop.permute.xlu1 %596 }
 0x179   :  { %v630_v62 = vadd.f32 %v597_v53, %v566_v63  ;;  %v595_v15 = vpop.permute.xlu0 %594 }
 0x17a   :  { %v692_v35 = vadd.f32 %v691_v61, %v690_v17  ;;  %v697_v54 = vadd.f32 %v696_v20, %v695_v19  ;;  %v629_v34 = vadd.f32 %v595_v15, %v565_v8 }
 0x17b   :  { %v646_v10 = vsel %vm1200_vm5, %v630_v62, 0.0 }
 0x17c   :  { %v724_v30 = vmul.f32 0.0625, %v692_v35  ;;  %v698_v7 = vrot.slane %v697_v54, 2  ;;  %v711_v31 = vsel %vm303_vm6, %v646_v10, 0.0  ;;  %v645_v18 = vsel %vm1192_vm4, %v629_v34, 0.0 }
 0x17d   :  { %v713_v58 = vadd.f32 %v712_v56, %v711_v31  ;;  %v703_v46 = vsel %vm303_vm6, %v645_v18, 0.0 }
 0x17e   :  { %v699_v3 = vadd.f32 %v698_v7, %v697_v54  ;;  %v704_v25 = vadd.f32 %v703_v46, %v702_v14  ;;  %v739_v28 = vsel %vm398_vm10, %v724_v30, %v738_v51 }
 0x17f   :  { %v714_v42 = vrot.slane %v713_v58, 4 }
 0x180   :  { %v700_v11 = vrot.slane %v699_v3, 1  ;;  %v705_v60 = vrot.slane %v704_v25, 4 }
 0x181   :  { %v715_v59 = vadd.f32 %v714_v42, %v713_v58 }
 0x182   :  { %v701_v21 = vadd.f32 %v700_v11, %v699_v3  ;;  %v706_v41 = vadd.f32 %v705_v60, %v704_v25 }
 0x183   :  { %v716_v0 = vrot.slane %v715_v59, 2 }
 0x184   :  { %v725_v22 = vmul.f32 0.0625, %v701_v21  ;;  %v707_v49 = vrot.slane %v706_v41, 2 }
 0x185   :  { %v717_v27 = vadd.f32 %v716_v0, %v715_v59 }
 0x186   :  { %v708_v13 = vadd.f32 %v707_v49, %v706_v41  ;;  %v740_v39 = vsel %vm400_vm11, %v725_v22, %v739_v28 }
 0x187   :  { %v718_v29 = vrot.slane %v717_v27, 1 }
 0x188   :  { %v709_v37 = vrot.slane %v708_v13, 1 }
 0x189   :  { %v719_v4 = vadd.f32 %v718_v29, %v717_v27 }
 0x18a   :  { %v710_v26 = vadd.f32 %v709_v37, %v708_v13 }
 0x18b   :  { %v727_v16 = vmul.f32 0.0625, %v719_v4 }
 0x18c   :  { %v726_v51 = vmul.f32 0.0625, %v710_v26 }
 0x18e   :  { %v741_v45 = vsel %vm402_vm12, %v726_v51, %v740_v39 }
 0x18f   :  { %v742_v38 = vsel %vm404_vm13, %v727_v16, %v741_v45 }
 0x190   :  { %744 = vst.msk [vmem:[#allocation8] sm:$0xff] %vm303_vm6, %v742_v38 }
 0x191   :  { %766 = dma.vmem_to_hbm [thread:$0]  %s762_s30, 128, %s764_s6, [#allocation9]  }
 0x192   :  { %888 = dma.done.wait [#allocation4], 128  }
 0x193   :  { %889 = vsyncadd [#allocation4], 4294967168 }
 0x194   :  { %890 = dma.done.wait [#allocation9], 128  }
 0x195   :  { %891 = vsyncadd [#allocation9], 4294967168 }
 0x196   :  { %775 = vsyncpa [#allocation3], 1 }
 0x197   :  { %776 = vsyncpa [#allocation6], 1 }
 0x198   :  { %777 = vsyncpa [#allocation4], 1 }
 0x199   :  { %778 = vsyncpa [#allocation9], 1 }

</bundles_post_ra>
